<compile_context>
chip_gen: v6e
topology: v6e:2x2x1
jax: 0.10.0
libtpu: 0.0.40
codegen_flags: <defaults>
</compile_context>

<pallas_src>
import jax
import jax.numpy as jnp
from jax.experimental import pallas as pl
from jax.experimental.pallas import tpu as pltpu

NUM_MD_LABELS = 3
ED_DIM = 100
OUT_PAD = 128  # 100 ED lanes + 3 MD lanes + 25 zero-pad lanes


def _round_up(x, m):
    return ((x + m - 1) // m) * m


def fuse_md_ed_head_params(w_md, b_md, w_ed, b_ed, dtype=jnp.float32):
    """Build the fused [W_ed | W_md | pad] weight/bias ONCE (init time, not per call).

    w_md: (H, 3), b_md: (3,), w_ed: (H, 100), b_ed: (100,)  (already stored (H, out)).
    Returns w_fused (H, 128), b_fused (1, 128) in `dtype` (use jnp.bfloat16 for the
    bf16-ingest path).
    """
    H = w_md.shape[0]
    w_fused = jnp.zeros((H, OUT_PAD), dtype=dtype)
    w_fused = w_fused.at[:, :ED_DIM].set(w_ed.astype(dtype))
    w_fused = w_fused.at[:, ED_DIM:ED_DIM + NUM_MD_LABELS].set(w_md.astype(dtype))
    b_fused = jnp.zeros((1, OUT_PAD), dtype=dtype)
    b_fused = b_fused.at[0, :ED_DIM].set(b_ed.astype(dtype))
    b_fused = b_fused.at[0, ED_DIM:ED_DIM + NUM_MD_LABELS].set(b_md.astype(dtype))
    return w_fused, b_fused


def _fused_heads_kernel(x_ref, w_ref, b_ref, o_ref):
    # x_ref: (tm, H) token tile; w_ref: (H, 128) fused weight; b_ref: (1, 128) fused bias
    # o_ref: (tm, 128) lane-dense fused output  [ED | MD | pad]
    x = x_ref[...]
    y = jnp.dot(x, w_ref[...], preferred_element_type=jnp.float32)
    y = y + b_ref[...].astype(jnp.float32)
    # tanh only on ED lanes (0..99): single compare. MD lanes (100..102) stay linear;
    # pad lanes (103..127) are zero either way (zero weight + zero bias).
    lane = jax.lax.broadcasted_iota(jnp.int32, y.shape, dimension=1)
    y = jnp.where(lane < ED_DIM, jnp.tanh(y), y)
    o_ref[...] = y.astype(o_ref.dtype)


def bert_md_ed_heads_fused(logits, w_fused, b_fused, *, tm=1024, x_buffers=3,
                           out_dtype=jnp.float32, return_fused=False):
    """Fused MD/ED head.  logits: (N, H); w_fused: (H, 128); b_fused: (1, 128).

    Compute dtype follows w_fused.dtype (pass bf16 fused params for the bf16 ingest
    path; the matmul still accumulates in f32).  Returns (md_pred (N,3), ed_pred (N,100))
    or the raw (N, 128) fused buffer if return_fused=True.
    """
    N, H = logits.shape
    compute_dtype = w_fused.dtype
    if logits.dtype != compute_dtype:
        logits = logits.astype(compute_dtype)  # bf16 ingest: halves the dominant HBM read

    c_item = jnp.dtype(compute_dtype).itemsize
    o_item = jnp.dtype(out_dtype).itemsize
    sub = 16 if c_item == 2 else 8  # bf16 sublane packing wants multiples of 16

    # Per-chip VMEM budget: v7x has 64 MiB physical VMEM, v5e/v6e have 128 MiB.
    try:
        phys_vmem = pltpu.get_tpu_info().vmem_capacity_bytes
    except Exception:
        phys_vmem = 128 << 20
    scoped_cap = (36 << 20) if phys_vmem <= (64 << 20) else (64 << 20)

    # Grid-invariant (single-buffered) weights + bias, plus headroom for compiler scratch.
    fixed_bytes = H * OUT_PAD * c_item + OUT_PAD * c_item + (2 << 20)

    # Token tile: as big as the VMEM budget allows, but at least 2 grid steps when N
    # allows (so the "parallel" axis shards across both v7x TensorCores).
    tm_eff = min(tm, _round_up(N, sub))
    if N >= 2 * sub:
        tm_eff = min(tm_eff, _round_up(-(-N // 2), sub))
    per_row = x_buffers * H * c_item + 2 * OUT_PAD * o_item
    tm_vmem = (scoped_cap - fixed_bytes) // per_row
    tm_eff = min(tm_eff, max(sub, tm_vmem))
    tm_eff = max(sub, (tm_eff // sub) * sub)

    # No full-array pad: ragged last block handled by Pallas (OOB writes are dropped,
    # OOB reads only feed the dropped rows since each output row depends on its own input row).
    num_steps = pl.cdiv(N, tm_eff)
    grid = (num_steps,)

    # Don't allocate more input buffers than the pipeline can use.
    x_buf_eff = int(max(1, min(x_buffers, max(2, num_steps))))

    vmem_needed = (x_buf_eff * tm_eff * H * c_item
                   + 2 * tm_eff * OUT_PAD * o_item
                   + H * OUT_PAD * c_item + OUT_PAD * c_item
                   + (2 << 20))
    vmem_limit = int(min(max(vmem_needed, 16 << 20), scoped_cap))

    cost = pl.CostEstimate(
        flops=2 * N * H * OUT_PAD,
        transcendentals=N * ED_DIM,  # tanh only touches the 100 ED lanes
        bytes_accessed=(N * H * c_item + H * OUT_PAD * c_item + OUT_PAD * c_item
                        + N * OUT_PAD * o_item),
    )

    fused = pl.pallas_call(
        _fused_heads_kernel,
        out_shape=jax.ShapeDtypeStruct((N, OUT_PAD), out_dtype),
        grid_spec=pltpu.PrefetchScalarGridSpec(
            num_scalar_prefetch=0,
            grid=grid,
            in_specs=[
                # Streaming token tile: multi-buffered to keep the DMA queue full.
                pl.BlockSpec((tm_eff, H), lambda i: (i, 0),
                             pipeline_mode=pl.Buffered(x_buf_eff)),
                # Grid-invariant weight/bias: single-buffered to save VMEM.
                pl.BlockSpec((H, OUT_PAD), lambda i: (0, 0),
                             pipeline_mode=pl.Buffered(1)),
                pl.BlockSpec((1, OUT_PAD), lambda i: (0, 0),
                             pipeline_mode=pl.Buffered(1)),
            ],
            out_specs=pl.BlockSpec((tm_eff, OUT_PAD), lambda i: (i, 0)),
        ),
        compiler_params=pltpu.CompilerParams(
            dimension_semantics=("parallel",),
            vmem_limit_bytes=vmem_limit,
        ),
        cost_estimate=cost,
    )(logits, w_fused, b_fused)

    if return_fused:
        # Consumers can index lanes [0:100] (ED) / [100:103] (MD) directly, avoiding
        # any post-kernel relayout traffic.
        return fused
    ed_pred = fused[:, :ED_DIM]                          # lane-0 aligned slice
    md_pred = fused[:, ED_DIM:ED_DIM + NUM_MD_LABELS]    # tiny 3-lane slice
    return md_pred, ed_pred


def bert_md_ed_heads(logits, w_md, b_md, w_ed, b_ed, **kwargs):
    """Convenience wrapper (fuses the parameters per call).

    Prefer calling fuse_md_ed_head_params() once at init and bert_md_ed_heads_fused()
    per step to avoid rebuilding the (H, 128) fused weight every invocation.
    """
    w_fused, b_fused = fuse_md_ed_head_params(
        w_md, b_md, w_ed, b_ed, dtype=kwargs.pop("compute_dtype", logits.dtype))
    return bert_md_ed_heads_fused(logits, w_fused, b_fused, **kwargs)


if __name__ == "__main__":
    # Small, deterministic setup consistent with the module: n_tokens=8, hidden_size=32.
    N, H = 8, 32

    key = jax.random.PRNGKey(0)
    k_x, k_wmd, k_bmd, k_wed, k_bed = jax.random.split(key, 5)

    logits = jax.random.normal(k_x, (N, H), dtype=jnp.float32)

    # Deterministic "parameter init" (module shapes: Linear(H,3), Linear(H,100)),
    # stored pre-transposed (H, out) so the kernel computes x @ W + b directly.
    w_md = jax.random.normal(k_wmd, (H, NUM_MD_LABELS), dtype=jnp.float32) * 0.02
    b_md = jax.random.normal(k_bmd, (NUM_MD_LABELS,), dtype=jnp.float32) * 0.02
    w_ed = jax.random.normal(k_wed, (H, ED_DIM), dtype=jnp.float32) * 0.02
    b_ed = jax.random.normal(k_bed, (ED_DIM,), dtype=jnp.float32) * 0.02

    # Hoisted (init-time) fused parameter construction — done once, not per call.
    w_fused, b_fused = fuse_md_ed_head_params(w_md, b_md, w_ed, b_ed, dtype=jnp.float32)

    md_pred, ed_pred = bert_md_ed_heads_fused(logits, w_fused, b_fused)
    md_pred = jax.block_until_ready(md_pred)
    ed_pred = jax.block_until_ready(ed_pred)

    # Pure-JAX reference check.
    md_ref = logits @ w_md + b_md
    ed_ref = jnp.tanh(logits @ w_ed + b_ed)
    assert md_pred.shape == (N, NUM_MD_LABELS)
    assert ed_pred.shape == (N, ED_DIM)
    assert jnp.allclose(md_pred, md_ref, atol=1e-5, rtol=1e-5)
    assert jnp.allclose(ed_pred, ed_ref, atol=1e-5, rtol=1e-5)

    print("KERNEL_OK")
</pallas_src>

<mosaic_0001>
module attributes {stable_mosaic.version = 11 : i64} {
  func.func @_fused_heads_kernel(%arg0: i32, %arg1: memref<8x32xf32, #tpu.memory_space<vmem>>, %arg2: memref<32x128xf32, #tpu.memory_space<vmem>>, %arg3: memref<1x128xf32, #tpu.memory_space<vmem>>, %arg4: memref<8x128xf32, #tpu.memory_space<vmem>>) attributes {dimension_semantics = [#tpu.dimension_semantics<parallel>], iteration_bounds = array<i64: 1>, scalar_prefetch = 0 : i64, scratch_operands = 0 : i64, tpu.core_type = #tpu.core_type<tc>, window_params = [{pipeline_mode = #tpu.pipeline_mode<double_buffered>, transform_indices = @transform_0, window_bounds = array<i64: 8, 32>}, {pipeline_mode = #tpu.pipeline_mode<synchronous>, transform_indices = @transform_1, window_bounds = array<i64: 32, 128>}, {pipeline_mode = #tpu.pipeline_mode<synchronous>, transform_indices = @transform_2, window_bounds = array<i64: 1, 128>}, {transform_indices = @transform_3, window_bounds = array<i64: 8, 128>}]} {
    %c0 = arith.constant 0 : index
    %c0_0 = arith.constant 0 : index
    %0 = vector.load %arg1[%c0, %c0_0] : memref<8x32xf32, #tpu.memory_space<vmem>>, vector<8x32xf32>
    %c0_1 = arith.constant 0 : index
    %c0_2 = arith.constant 0 : index
    %1 = vector.load %arg2[%c0_1, %c0_2] : memref<32x128xf32, #tpu.memory_space<vmem>>, vector<32x128xf32>
    %cst = arith.constant dense<0.000000e+00> : vector<8x128xf32>
    %2 = tpu.matmul %0, %1, %cst {dimension_numbers = #tpu.dot_dimension_numbers<[1], [0], [0], [1], [0, 0, 1, 1], [], []>} : vector<8x32xf32>, vector<32x128xf32>, vector<8x128xf32> -> vector<8x128xf32>
    %c0_3 = arith.constant 0 : index
    %c0_4 = arith.constant 0 : index
    %3 = vector.load %arg3[%c0_3, %c0_4] : memref<1x128xf32, #tpu.memory_space<vmem>>, vector<1x128xf32>
    %4 = vector.broadcast %3 : vector<1x128xf32> to vector<8x128xf32>
    %5 = arith.addf %2, %4 : vector<8x128xf32>
    %6 = tpu.iota {dimensions = array<i32: 1>} : vector<8x128xi32>
    %c100_i32 = arith.constant 100 : i32
    %7 = vector.broadcast %c100_i32 : i32 to vector<8x128xi32>
    %8 = arith.cmpi slt, %6, %7 : vector<8x128xi32>
    %9 = math.tanh %5 : vector<8x128xf32>
    %10 = arith.select %8, %9, %5 : vector<8x128xi1>, vector<8x128xf32>
    %c0_5 = arith.constant 0 : index
    %c0_6 = arith.constant 0 : index
    %11 = vector.load %arg4[%c0_5, %c0_6] : memref<8x128xf32, #tpu.memory_space<vmem>>, vector<8x128xf32>
    tpu.vector_store %arg4[%c0_5, %c0_6], %10 {strides = array<i32>} : memref<8x128xf32, #tpu.memory_space<vmem>>, vector<8x128xf32>,
    return
  }
  func.func @transform_0(%arg0: i32) -> (i32, i32) {
    %c0_i32 = arith.constant 0 : i32
    %c0_i32_0 = arith.constant 0 : i32
    return %arg0, %c0_i32 : i32, i32
  }
  func.func @transform_1(%arg0: i32) -> (i32, i32) {
    %c0_i32 = arith.constant 0 : i32
    %c0_i32_0 = arith.constant 0 : i32
    %c0_i32_1 = arith.constant 0 : i32
    return %c0_i32, %c0_i32_0 : i32, i32
  }
  func.func @transform_2(%arg0: i32) -> (i32, i32) {
    %c0_i32 = arith.constant 0 : i32
    %c0_i32_0 = arith.constant 0 : i32
    %c0_i32_1 = arith.constant 0 : i32
    return %c0_i32, %c0_i32_0 : i32, i32
  }
  func.func @transform_3(%arg0: i32) -> (i32, i32) {
    %c0_i32 = arith.constant 0 : i32
    %c0_i32_0 = arith.constant 0 : i32
    return %arg0, %c0_i32 : i32, i32
  }
}

</mosaic_0001>

<bundles_post_ra>
// kernel: tpu_custom_call.1
= control target key start
LH: loop header
LB: loop body
LE: loop exit
PB: predicated region body
PF: predicated region fallthrough
CT: control target
= control target key end

     0   :  { %8 = vsyncpa [#allocation3], 0  ;;  %s281_s0 = inlined_call_operand.hbm [shape: f32[8,32], index: 0, kind: input, shape index: {}]   ;;  %s282_s1 = inlined_call_operand.hbm [shape: f32[32,128], index: 1, kind: input, shape index: {}]   ;;  %s283_s2 = inlined_call_operand.vmem [shape: f32[1,128], index: 2, kind: input, shape index: {}]   ;;  %s284_s3 = inlined_call_operand.hbm [shape: f32[8,128], index: 3, kind: output, shape index: {}]  }
   0x1   :  { %9 = vsyncpa [#allocation6], 0 }
   0x2   :  { %10 = vsyncpa [#allocation4], 0  ;;  %s242_s12 = smov [#allocation2]   ;;  %s243_s14 = smov [#allocation5]  }
   0x3   :  { %s17_s13 = sshll.u32 %s242_s12, 4  ;;  %s26_s15 = sshll.u32 %s243_s14, 4  ;;  %s18_s13 = int_to_ptr.vmem [resolvable:$true] %s17_s13  ;;  %s27_s15 = int_to_ptr.vmem [resolvable:$true] %s26_s15 }
   0x4   :  { %s184_s16 = scalar_lea.vmem %s18_s13, 128  ;;  %p189_p1 = scmp.lt.s32.totalorder %s18_s13, %s18_s13 }
   0x5   :  { %p185_p0 = scmp.ne.s32.totalorder %s18_s13, %s184_s16  ;;  %p190_p2 = scmp.lt.s32.totalorder %s184_s16, %s184_s16 }
   0x7   :  { %p191_p3 = por %p190_p2, %p189_p1 }
   0x9   :  { %p192_p4 = pnand %p191_p3, %p185_p0 }
   0xb   :  { %195 = shalt.err (!%p192_p4)
}
   0xc   :  { %20 = dma.hbm_to_vmem [thread:$0]  %s281_s0, 128, %s18_s13, [#allocation3]  }
   0xd   :  { %s204_s19 = scalar_lea.vmem %s27_s15, 512  ;;  %p209_p6 = scmp.lt.s32.totalorder %s27_s15, %s27_s15 }
   0xe   :  { %p205_p5 = scmp.ne.s32.totalorder %s27_s15, %s204_s19  ;;  %p210_p7 = scmp.lt.s32.totalorder %s204_s19, %s204_s19 }
  0x10   :  { %p211_p8 = por %p210_p7, %p209_p6 }
  0x12   :  { %p212_p9 = pnand %p211_p8, %p205_p5 }
  0x14   :  { %215 = shalt.err (!%p212_p9)
}
  0x15   :  { %s244_s20 = smov 128   ;;  %s245_s21 = smov 8  }
  0x16   :  { %32 = dma.hbm_to_vmem [thread:$0]  %s282_s1, 512, %s27_s15, [#allocation6], %s244_s20, %s244_s20, %s245_s21  }
  0x17   :  { %236 = dma.done.wait [#allocation3], 128  }
  0x18   :  { %237 = vsyncadd [#allocation3], 4294967168 }
  0x19   :  { %238 = dma.done.wait [#allocation6], 512  }
  0x1a   :  { %239 = vsyncadd [#allocation6], 4294966784  ;;  %v246_v0 = vmov 0.0   ;;  %vm247_vm0 = vmmov 0   ;;  %v45_v1 = vld [vmem:[#allocation5 + $0x18] sm:$0xff]  ;;  %v44_v2 = vld [vmem:[#allocation5 + $0x10] sm:$0xff]  ;;  %v127_v10 = vlaneseq }
  0x1b   :  { %156 = vmatprep.subr.mxu0 %v246_v0  ;;  %164 = vmatprep.mubr.msk.f32.mxu0 %vm247_vm0, %v246_v0  ;;  %v43_v3 = vld [vmem:[#allocation5 + $0x8] sm:$0xff]  ;;  %v42_v4 = vld [vmem:[#allocation5] sm:$0xff]  ;;  %v41_v5 = vld [vmem:[#allocation2] sm:$0xff]  ;;  %vm53_vm1 = vcmask 261120   ;;  %s248_s24 = smov [#allocation7]  }
  0x1c   :  { %157 = vmatpush3.msra.mxu0 %v45_v1  ;;  %v149_v6 = vld [vmem:[%s283_s2] ss:$0 sm:$0xff]  ;;  %v128_v11 = vand.u32 127, %v127_v10  ;;  %s139_s25 = sshll.u32 %s248_s24, 4  ;;  %s140_s25 = int_to_ptr.vmem [resolvable:$true] %s139_s25 }
  0x1d   :  { %158 = vmatprep.subr.mxu0 %v246_v0  ;;  %s216_s26 = scalar_lea.vmem %s140_s25, 128  ;;  %p221_p11 = scmp.lt.s32.totalorder %s140_s25, %s140_s25 }
  0x1e   :  { %159 = vmatpush3.msra.mxu0 %v44_v2  ;;  %vm129_vm2 = vcmp.lt.s32.totalorder %v128_v11, 100  ;;  %p217_p10 = scmp.ne.s32.totalorder %s140_s25, %s216_s26  ;;  %p222_p12 = scmp.lt.s32.totalorder %s216_s26, %s216_s26 }
  0x1f   :  { %160 = vmatprep.subr.mxu0 %v246_v0 }
  0x20   :  { %161 = vmatpush3.msra.mxu0 %v43_v3  ;;  %p223_p13 = por %p222_p12, %p221_p11 }
  0x21   :  { %162 = vmatprep.subr.mxu0 %v246_v0 }
  0x22   :  { %163 = vmatpush3.msra.mxu0 %v42_v4  ;;  %p224_p0 = pnand %p223_p13, %p217_p10 }
  0x23   :  { %165 = vmatmul.mubr.msk.f32.vlgmr.msra.gmra.mxu0 %vm53_vm1, %v41_v5 }
  0xe3   :  { %v123_v7 = vpop.f32.mrf.mxu0 }
  0xe4   :  { %v124_v8 = vadd.f32 %v149_v6, %v123_v7 }
  0xe5   :  { %v166_v9 = vpop.f32.mrf.mxu0 }
  0xe6   :  { %174 = vtanh.f32 %v124_v8 }
  0xf3   :  { %v175_v12 = vpop.eup %174 }
  0xf4   :  { %v131_v13 = vsel %vm129_vm2, %v175_v12, %v124_v8 }
  0xf5   :  { %132 = vst [vmem:[#allocation7] sm:$0xff] %v131_v13 }
  0xf6   :  { %227 = shalt.err (!%p224_p0)
}
  0xf7   :  { %142 = dma.vmem_to_hbm [thread:$0]  %s140_s25, 128, %s284_s3, [#allocation4]  }
  0xf8   :  { %240 = dma.done.wait [#allocation4], 128  }
  0xf9   :  { %241 = vsyncadd [#allocation4], 4294967168 }
  0xfa   :  { %146 = vsyncpa [#allocation3], 1 }
  0xfb   :  { %147 = vsyncpa [#allocation6], 1 }
  0xfc   :  { %148 = vsyncpa [#allocation4], 1 }

</bundles_post_ra>
